<compile_context>
chip_gen: v6e
topology: v6e:2x2x1
jax: 0.10.0
libtpu: 0.0.40
codegen_flags: <defaults>
</compile_context>

<pallas_src>
import jax
import jax.numpy as jnp
from jax.experimental import pallas as pl
from jax.experimental.pallas import tpu as pltpu


def _round_up(n, m):
    return ((n + m - 1) // m) * m


def _tpu_vmem_bytes():
    """Physical VMEM per TensorCore; conservative v7x value if unknown."""
    try:
        return int(pltpu.get_tpu_info().vmem_capacity_bytes)
    except Exception:
        return 64 << 20


def _batch_dim_semantics():
    """CORE_PARALLEL on dual-TensorCore chips (v7x), plain 'parallel' elsewhere."""
    try:
        kind = jax.devices()[0].device_kind.lower()
        if "v7" in kind:
            return (pltpu.CORE_PARALLEL,)
    except Exception:
        pass
    return ("parallel",)


def _vae_kernel(x_ref, w1_ref, b1_ref, w2_ref, b2_ref, w3_ref, b3_ref,
                w4_ref, b4_ref, eps_ref, recon_ref, mu_ref, logvar_ref):
    """One batch tile of the LinearVAE forward (lane-padded, bf16 MXU operands)."""
    lat_p = mu_ref.shape[-1]            # multiple of 128 -> lane-aligned slice below
    bf16 = jnp.bfloat16

    # encode: enc1 -> relu   (bf16 operands, f32 accumulation)
    x = x_ref[...].astype(bf16)
    h1 = jnp.dot(x, w1_ref[...], preferred_element_type=jnp.float32) + b1_ref[...]
    h1 = jnp.maximum(h1, 0.0).astype(bf16)

    # enc2 fused: one N = 2*lat_p matmul, then a static lane-aligned split.
    enc = jnp.dot(h1, w2_ref[...], preferred_element_type=jnp.float32) + b2_ref[...]
    mu = enc[:, :lat_p]
    log_var = enc[:, lat_p:]

    # reparameterize: z = mu + eps * exp(0.5 * log_var)   (f32 elementwise)
    z = mu + eps_ref[...] * jnp.exp(0.5 * log_var)

    # decode: dec1 -> relu -> dec2 -> sigmoid
    h2 = jnp.dot(z.astype(bf16), w3_ref[...],
                 preferred_element_type=jnp.float32) + b3_ref[...]
    h2 = jnp.maximum(h2, 0.0).astype(bf16)
    logits = jnp.dot(h2, w4_ref[...],
                     preferred_element_type=jnp.float32) + b4_ref[...]

    recon_ref[...] = jax.nn.sigmoid(logits)
    mu_ref[...] = mu
    logvar_ref[...] = log_var


def linear_vae_forward(x, params, eps, *, batch_tile=None):
    """LinearVAE forward in one batch-gridded Pallas kernel.

    x:      (B, in_features) f32
    params: dict w1,b1,w2,b2,w3,b3,w4,b4 with weights (in, out), biases (1, out);
            w2/b2 are the fused enc2 params of width 2*latent (split+fused here).
    eps:    (B, latent_features) f32 standard-normal noise
    Returns (reconstruction, mu, log_var) at the original (unpadded) shapes, f32.
    """
    B, in_features = x.shape
    latent = eps.shape[-1]
    second = params["w1"].shape[1]

    # Lane-pad every feature dim to a multiple of 128 -> unmasked vregs / MXU tiles.
    in_p = _round_up(in_features, 128)
    sec_p = _round_up(second, 128)
    lat_p = _round_up(latent, 128)

    vmem_cap = _tpu_vmem_bytes()
    big_vmem = vmem_cap >= (96 << 20)           # v5e/v6e (128 MiB) vs v7x (64 MiB)

    if batch_tile is None:
        max_tile = 512 if big_vmem else 256
        batch_tile = min(max_tile, _round_up(B, 8))
        # If the whole batch fits one tile but can be split, use two tiles so a
        # second TensorCore (v7x) gets work; near-free on single-TC chips.
        if B > 8 and batch_tile == _round_up(B, 8):
            batch_tile = _round_up((B + 1) // 2, 8)
    tb = batch_tile
    b_p = _round_up(B, tb)
    grid = (b_p // tb,)

    def pad2(a, rows, cols, dtype=jnp.float32):
        a = jnp.pad(a, ((0, rows - a.shape[0]), (0, cols - a.shape[1])))
        return a.astype(dtype)

    bf16 = jnp.bfloat16
    # Zero-padding is exact for the cropped region.
    x_p = pad2(x, b_p, in_p)
    eps_p = pad2(eps, b_p, lat_p)

    w1 = pad2(params["w1"], in_p, sec_p, bf16)
    b1 = pad2(params["b1"], 1, sec_p)
    # enc2 fused into one lane-padded (sec_p, 2*lat_p) weight: [mu cols | log_var cols].
    w2 = jnp.concatenate([pad2(params["w2"][:, :latent], sec_p, lat_p, bf16),
                          pad2(params["w2"][:, latent:], sec_p, lat_p, bf16)], axis=1)
    b2 = jnp.concatenate([pad2(params["b2"][:, :latent], 1, lat_p),
                          pad2(params["b2"][:, latent:], 1, lat_p)], axis=1)
    w3 = pad2(params["w3"], lat_p, sec_p, bf16)
    b3 = pad2(params["b3"], 1, sec_p)
    w4 = pad2(params["w4"], sec_p, in_p, bf16)
    b4 = pad2(params["b4"], 1, in_p)

    mm_params = in_p * sec_p + sec_p * (2 * lat_p) + lat_p * sec_p + sec_p * in_p
    cost = pl.CostEstimate(
        flops=2 * b_p * mm_params,
        transcendentals=b_p * (lat_p + in_p),                 # exp + sigmoid
        bytes_accessed=(4 * b_p * (2 * in_p + 3 * lat_p)      # x, eps, 3 outputs (f32)
                        + 2 * mm_params                        # bf16 weights
                        + 4 * (2 * sec_p + 2 * lat_p + in_p))) # f32 biases

    def build(use_buffered, dim_sem):
        const_pipe = pl.Buffered(buffer_count=1) if use_buffered else None

        def batch_spec(cols):
            return pl.BlockSpec((tb, cols), lambda i: (i, 0))

        def const_spec(rows, cols):
            # Block index never changes -> resident in VMEM across grid steps;
            # single-buffered when supported to halve its footprint.
            if const_pipe is not None:
                return pl.BlockSpec((rows, cols), lambda i: (0, 0),
                                    pipeline_mode=const_pipe)
            return pl.BlockSpec((rows, cols), lambda i: (0, 0))

        in_specs = [
            batch_spec(in_p),                 # x
            const_spec(in_p, sec_p),          # w1  (bf16)
            const_spec(1, sec_p),             # b1
            const_spec(sec_p, 2 * lat_p),     # w2 fused [mu | log_var]  (bf16)
            const_spec(1, 2 * lat_p),         # b2 fused
            const_spec(lat_p, sec_p),         # w3  (bf16)
            const_spec(1, sec_p),             # b3
            const_spec(sec_p, in_p),          # w4  (bf16)
            const_spec(1, in_p),              # b4
            batch_spec(lat_p),                # eps
        ]
        out_specs = (batch_spec(in_p), batch_spec(lat_p), batch_spec(lat_p))
        out_shapes = (
            jax.ShapeDtypeStruct((b_p, in_p), jnp.float32),    # reconstruction
            jax.ShapeDtypeStruct((b_p, lat_p), jnp.float32),   # mu
            jax.ShapeDtypeStruct((b_p, lat_p), jnp.float32),   # log_var
        )

        # Scoped-VMEM accounting: resident weights (1x if single-buffered else 2x),
        # double-buffered f32 I/O streams, and in-kernel f32/bf16 temporaries.
        weight_bytes = 2 * mm_params
        bias_bytes = 4 * (2 * sec_p + 2 * lat_p + in_p)
        const_bytes = (weight_bytes + bias_bytes) * (1 if use_buffered else 2)
        stream_bytes = 2 * 4 * tb * (2 * in_p + 3 * lat_p)
        temp_bytes = 6 * 4 * tb * max(sec_p, 2 * lat_p, in_p)
        hard_cap = (100 << 20) if big_vmem else (48 << 20)
        vmem_limit = int(min(max(const_bytes + stream_bytes + temp_bytes
                                 + (8 << 20), 16 << 20), hard_cap))

        return pl.pallas_call(
            _vae_kernel,
            out_shape=out_shapes,
            grid_spec=pltpu.PrefetchScalarGridSpec(
                num_scalar_prefetch=0,
                grid=grid,
                in_specs=in_specs,
                out_specs=out_specs,
            ),
            compiler_params=pltpu.CompilerParams(
                dimension_semantics=dim_sem,
                vmem_limit_bytes=vmem_limit,
            ),
            cost_estimate=cost,
        )

    args = (x_p, w1, b1, w2, b2, w3, b3, w4, b4, eps_p)
    try:
        outs = jax.block_until_ready(build(True, _batch_dim_semantics())(*args))
    except Exception:
        # Conservative fallback for Pallas builds without Buffered/core-parallel.
        outs = jax.block_until_ready(build(False, ("arbitrary",))(*args))

    recon_p, mu_p, lv_p = outs
    # Crop padded lanes/rows back to the logical shapes.
    return (recon_p[:B, :in_features], mu_p[:B, :latent], lv_p[:B, :latent])


def init_params(key, in_features, second_features, latent_features):
    """Deterministic synthetic parameters (weights stored as (in, out), f32)."""
    ks = jax.random.split(key, 8)

    def w(k, fan_in, fan_out):
        return (jax.random.normal(k, (fan_in, fan_out), jnp.float32)
                * (1.0 / jnp.sqrt(fan_in)))

    def b(k, fan_out):
        return jax.random.normal(k, (1, fan_out), jnp.float32) * 0.01

    return {
        "w1": w(ks[0], in_features, second_features),
        "b1": b(ks[1], second_features),
        "w2": w(ks[2], second_features, latent_features * 2),
        "b2": b(ks[3], latent_features * 2),
        "w3": w(ks[4], latent_features, second_features),
        "b3": b(ks[5], second_features),
        "w4": w(ks[6], second_features, in_features),
        "b4": b(ks[7], in_features),
    }


def reference_forward(x, params, eps):
    """Pure-JAX f32 reference mirroring the PyTorch module semantics."""
    h1 = jnp.maximum(x @ params["w1"] + params["b1"], 0.0)
    enc = h1 @ params["w2"] + params["b2"]
    latent = eps.shape[-1]
    enc = enc.reshape(-1, 2, latent)
    mu, log_var = enc[:, 0, :], enc[:, 1, :]
    z = mu + eps * jnp.exp(0.5 * log_var)
    h2 = jnp.maximum(z @ params["w3"] + params["b3"], 0.0)
    recon = jax.nn.sigmoid(h2 @ params["w4"] + params["b4"])
    return recon, mu, log_var


if __name__ == "__main__":
    in_features = 16
    second_features = 32
    latent_features = 8
    batch = 8

    key = jax.random.PRNGKey(0)
    k_params, k_x, k_eps = jax.random.split(key, 3)

    params = init_params(k_params, in_features, second_features, latent_features)
    x = jax.random.uniform(k_x, (batch, in_features), jnp.float32)
    # TODO(synk): torch.randn_like noise is drawn host-side and passed in; an
    # in-kernel pltpu.prng_seed/stateful_normal path (scalar-prefetch seed)
    # would drop this HBM stream but change the RNG stream vs the reference.
    eps = jax.random.normal(k_eps, (batch, latent_features), jnp.float32)

    recon, mu, log_var = linear_vae_forward(x, params, eps)
    jax.block_until_ready((recon, mu, log_var))

    # Correctness vs f32 reference; bf16 MXU operands -> relaxed tolerances.
    recon_exp, mu_exp, lv_exp = reference_forward(x, params, eps)
    assert jnp.allclose(mu, mu_exp, atol=5e-2, rtol=5e-2), "mu mismatch"
    assert jnp.allclose(log_var, lv_exp, atol=5e-2, rtol=5e-2), "log_var mismatch"
    assert jnp.allclose(recon, recon_exp, atol=5e-2, rtol=5e-2), "reconstruction mismatch"

    print("KERNEL_OK")
</pallas_src>

<mosaic_0001>
module attributes {stable_mosaic.version = 11 : i64} {
  func.func @_vae_kernel(%arg0: i32, %arg1: memref<8x128xf32, #tpu.memory_space<vmem>>, %arg2: memref<128x128xbf16, #tpu.memory_space<vmem>>, %arg3: memref<1x128xf32, #tpu.memory_space<vmem>>, %arg4: memref<128x256xbf16, #tpu.memory_space<vmem>>, %arg5: memref<1x256xf32, #tpu.memory_space<vmem>>, %arg6: memref<128x128xbf16, #tpu.memory_space<vmem>>, %arg7: memref<1x128xf32, #tpu.memory_space<vmem>>, %arg8: memref<128x128xbf16, #tpu.memory_space<vmem>>, %arg9: memref<1x128xf32, #tpu.memory_space<vmem>>, %arg10: memref<8x128xf32, #tpu.memory_space<vmem>>, %arg11: memref<8x128xf32, #tpu.memory_space<vmem>>, %arg12: memref<8x128xf32, #tpu.memory_space<vmem>>, %arg13: memref<8x128xf32, #tpu.memory_space<vmem>>) attributes {dimension_semantics = [#tpu.dimension_semantics<parallel>], iteration_bounds = array<i64: 1>, scalar_prefetch = 0 : i64, scratch_operands = 0 : i64, tpu.core_type = #tpu.core_type<tc>, window_params = [{transform_indices = @transform_0, window_bounds = array<i64: 8, 128>}, {pipeline_mode = #tpu.pipeline_mode<synchronous>, transform_indices = @transform_1, window_bounds = array<i64: 128, 128>}, {pipeline_mode = #tpu.pipeline_mode<synchronous>, transform_indices = @transform_2, window_bounds = array<i64: 1, 128>}, {pipeline_mode = #tpu.pipeline_mode<synchronous>, transform_indices = @transform_3, window_bounds = array<i64: 128, 256>}, {pipeline_mode = #tpu.pipeline_mode<synchronous>, transform_indices = @transform_4, window_bounds = array<i64: 1, 256>}, {pipeline_mode = #tpu.pipeline_mode<synchronous>, transform_indices = @transform_5, window_bounds = array<i64: 128, 128>}, {pipeline_mode = #tpu.pipeline_mode<synchronous>, transform_indices = @transform_6, window_bounds = array<i64: 1, 128>}, {pipeline_mode = #tpu.pipeline_mode<synchronous>, transform_indices = @transform_7, window_bounds = array<i64: 128, 128>}, {pipeline_mode = #tpu.pipeline_mode<synchronous>, transform_indices = @transform_8, window_bounds = array<i64: 1, 128>}, {transform_indices = @transform_9, window_bounds = array<i64: 8, 128>}, {transform_indices = @transform_10, window_bounds = array<i64: 8, 128>}, {transform_indices = @transform_11, window_bounds = array<i64: 8, 128>}, {transform_indices = @transform_12, window_bounds = array<i64: 8, 128>}]} {
    %c0 = arith.constant 0 : index
    %c0_0 = arith.constant 0 : index
    %0 = vector.load %arg1[%c0, %c0_0] : memref<8x128xf32, #tpu.memory_space<vmem>>, vector<8x128xf32>
    %1 = arith.truncf %0 : vector<8x128xf32> to vector<8x128xbf16>
    %c0_1 = arith.constant 0 : index
    %c0_2 = arith.constant 0 : index
    %2 = vector.load %arg2[%c0_1, %c0_2] : memref<128x128xbf16, #tpu.memory_space<vmem>>, vector<128x128xbf16>
    %cst = arith.constant dense<0.000000e+00> : vector<8x128xf32>
    %3 = tpu.matmul %1, %2, %cst {dimension_numbers = #tpu.dot_dimension_numbers<[1], [0], [0], [1], [0, 0, 1, 1], [], []>} : vector<8x128xbf16>, vector<128x128xbf16>, vector<8x128xf32> -> vector<8x128xf32>
    %c0_3 = arith.constant 0 : index
    %c0_4 = arith.constant 0 : index
    %4 = vector.load %arg3[%c0_3, %c0_4] : memref<1x128xf32, #tpu.memory_space<vmem>>, vector<1x128xf32>
    %5 = vector.broadcast %4 : vector<1x128xf32> to vector<8x128xf32>
    %6 = arith.addf %3, %5 : vector<8x128xf32>
    %cst_5 = arith.constant 0.000000e+00 : f32
    %7 = vector.broadcast %cst_5 : f32 to vector<8x128xf32>
    %8 = arith.maximumf %6, %7 : vector<8x128xf32>
    %9 = arith.truncf %8 : vector<8x128xf32> to vector<8x128xbf16>
    %c0_6 = arith.constant 0 : index
    %c0_7 = arith.constant 0 : index
    %10 = vector.load %arg4[%c0_6, %c0_7] : memref<128x256xbf16, #tpu.memory_space<vmem>>, vector<128x256xbf16>
    %cst_8 = arith.constant dense<0.000000e+00> : vector<8x256xf32>
    %11 = tpu.matmul %9, %10, %cst_8 {dimension_numbers = #tpu.dot_dimension_numbers<[1], [0], [0], [1], [0, 0, 1, 1], [], []>} : vector<8x128xbf16>, vector<128x256xbf16>, vector<8x256xf32> -> vector<8x256xf32>
    %c0_9 = arith.constant 0 : index
    %c0_10 = arith.constant 0 : index
    %12 = vector.load %arg5[%c0_9, %c0_10] : memref<1x256xf32, #tpu.memory_space<vmem>>, vector<1x256xf32>
    %13 = vector.broadcast %12 : vector<1x256xf32> to vector<8x256xf32>
    %14 = arith.addf %11, %13 : vector<8x256xf32>
    %15 = vector.extract_strided_slice %14 {offsets = [0, 0], sizes = [8, 128], strides = [1, 1]} : vector<8x256xf32> to vector<8x128xf32>
    %16 = vector.extract_strided_slice %14 {offsets = [0, 128], sizes = [8, 128], strides = [1, 1]} : vector<8x256xf32> to vector<8x128xf32>
    %c0_11 = arith.constant 0 : index
    %c0_12 = arith.constant 0 : index
    %17 = vector.load %arg10[%c0_11, %c0_12] : memref<8x128xf32, #tpu.memory_space<vmem>>, vector<8x128xf32>
    %cst_13 = arith.constant 5.000000e-01 : f32
    %18 = vector.broadcast %cst_13 : f32 to vector<8x128xf32>
    %19 = arith.mulf %18, %16 : vector<8x128xf32>
    %20 = math.exp %19 : vector<8x128xf32>
    %21 = arith.mulf %17, %20 : vector<8x128xf32>
    %22 = arith.addf %15, %21 : vector<8x128xf32>
    %23 = arith.truncf %22 : vector<8x128xf32> to vector<8x128xbf16>
    %c0_14 = arith.constant 0 : index
    %c0_15 = arith.constant 0 : index
    %24 = vector.load %arg6[%c0_14, %c0_15] : memref<128x128xbf16, #tpu.memory_space<vmem>>, vector<128x128xbf16>
    %cst_16 = arith.constant dense<0.000000e+00> : vector<8x128xf32>
    %25 = tpu.matmul %23, %24, %cst_16 {dimension_numbers = #tpu.dot_dimension_numbers<[1], [0], [0], [1], [0, 0, 1, 1], [], []>} : vector<8x128xbf16>, vector<128x128xbf16>, vector<8x128xf32> -> vector<8x128xf32>
    %c0_17 = arith.constant 0 : index
    %c0_18 = arith.constant 0 : index
    %26 = vector.load %arg7[%c0_17, %c0_18] : memref<1x128xf32, #tpu.memory_space<vmem>>, vector<1x128xf32>
    %27 = vector.broadcast %26 : vector<1x128xf32> to vector<8x128xf32>
    %28 = arith.addf %25, %27 : vector<8x128xf32>
    %cst_19 = arith.constant 0.000000e+00 : f32
    %29 = vector.broadcast %cst_19 : f32 to vector<8x128xf32>
    %30 = arith.maximumf %28, %29 : vector<8x128xf32>
    %31 = arith.truncf %30 : vector<8x128xf32> to vector<8x128xbf16>
    %c0_20 = arith.constant 0 : index
    %c0_21 = arith.constant 0 : index
    %32 = vector.load %arg8[%c0_20, %c0_21] : memref<128x128xbf16, #tpu.memory_space<vmem>>, vector<128x128xbf16>
    %cst_22 = arith.constant dense<0.000000e+00> : vector<8x128xf32>
    %33 = tpu.matmul %31, %32, %cst_22 {dimension_numbers = #tpu.dot_dimension_numbers<[1], [0], [0], [1], [0, 0, 1, 1], [], []>} : vector<8x128xbf16>, vector<128x128xbf16>, vector<8x128xf32> -> vector<8x128xf32>
    %c0_23 = arith.constant 0 : index
    %c0_24 = arith.constant 0 : index
    %34 = vector.load %arg9[%c0_23, %c0_24] : memref<1x128xf32, #tpu.memory_space<vmem>>, vector<1x128xf32>
    %35 = vector.broadcast %34 : vector<1x128xf32> to vector<8x128xf32>
    %36 = arith.addf %33, %35 : vector<8x128xf32>
    %37 = arith.negf %36 : vector<8x128xf32>
    %38 = math.exp %37 : vector<8x128xf32>
    %cst_25 = arith.constant 1.000000e+00 : f32
    %39 = vector.broadcast %cst_25 : f32 to vector<8x128xf32>
    %40 = arith.addf %39, %38 : vector<8x128xf32>
    %41 = arith.divf %39, %40 : vector<8x128xf32>
    %c0_26 = arith.constant 0 : index
    %c0_27 = arith.constant 0 : index
    %42 = vector.load %arg11[%c0_26, %c0_27] : memref<8x128xf32, #tpu.memory_space<vmem>>, vector<8x128xf32>
    tpu.vector_store %arg11[%c0_26, %c0_27], %41 {strides = array<i32>} : memref<8x128xf32, #tpu.memory_space<vmem>>, vector<8x128xf32>,
    %c0_28 = arith.constant 0 : index
    %c0_29 = arith.constant 0 : index
    %43 = vector.load %arg12[%c0_28, %c0_29] : memref<8x128xf32, #tpu.memory_space<vmem>>, vector<8x128xf32>
    tpu.vector_store %arg12[%c0_28, %c0_29], %15 {strides = array<i32>} : memref<8x128xf32, #tpu.memory_space<vmem>>, vector<8x128xf32>,
    %c0_30 = arith.constant 0 : index
    %c0_31 = arith.constant 0 : index
    %44 = vector.load %arg13[%c0_30, %c0_31] : memref<8x128xf32, #tpu.memory_space<vmem>>, vector<8x128xf32>
    tpu.vector_store %arg13[%c0_30, %c0_31], %16 {strides = array<i32>} : memref<8x128xf32, #tpu.memory_space<vmem>>, vector<8x128xf32>,
    return
  }
  func.func @transform_0(%arg0: i32) -> (i32, i32) {
    %c0_i32 = arith.constant 0 : i32
    %c0_i32_0 = arith.constant 0 : i32
    return %arg0, %c0_i32 : i32, i32
  }
  func.func @transform_1(%arg0: i32) -> (i32, i32) {
    %c0_i32 = arith.constant 0 : i32
    %c0_i32_0 = arith.constant 0 : i32
    %c0_i32_1 = arith.constant 0 : i32
    return %c0_i32, %c0_i32_0 : i32, i32
  }
  func.func @transform_2(%arg0: i32) -> (i32, i32) {
    %c0_i32 = arith.constant 0 : i32
    %c0_i32_0 = arith.constant 0 : i32
    %c0_i32_1 = arith.constant 0 : i32
    return %c0_i32, %c0_i32_0 : i32, i32
  }
  func.func @transform_3(%arg0: i32) -> (i32, i32) {
    %c0_i32 = arith.constant 0 : i32
    %c0_i32_0 = arith.constant 0 : i32
    %c0_i32_1 = arith.constant 0 : i32
    return %c0_i32, %c0_i32_0 : i32, i32
  }
  func.func @transform_4(%arg0: i32) -> (i32, i32) {
    %c0_i32 = arith.constant 0 : i32
    %c0_i32_0 = arith.constant 0 : i32
    %c0_i32_1 = arith.constant 0 : i32
    return %c0_i32, %c0_i32_0 : i32, i32
  }
  func.func @transform_5(%arg0: i32) -> (i32, i32) {
    %c0_i32 = arith.constant 0 : i32
    %c0_i32_0 = arith.constant 0 : i32
    %c0_i32_1 = arith.constant 0 : i32
    return %c0_i32, %c0_i32_0 : i32, i32
  }
  func.func @transform_6(%arg0: i32) -> (i32, i32) {
    %c0_i32 = arith.constant 0 : i32
    %c0_i32_0 = arith.constant 0 : i32
    %c0_i32_1 = arith.constant 0 : i32
    return %c0_i32, %c0_i32_0 : i32, i32
  }
  func.func @transform_7(%arg0: i32) -> (i32, i32) {
    %c0_i32 = arith.constant 0 : i32
    %c0_i32_0 = arith.constant 0 : i32
    %c0_i32_1 = arith.constant 0 : i32
    return %c0_i32, %c0_i32_0 : i32, i32
  }
  func.func @transform_8(%arg0: i32) -> (i32, i32) {
    %c0_i32 = arith.constant 0 : i32
    %c0_i32_0 = arith.constant 0 : i32
    %c0_i32_1 = arith.constant 0 : i32
    return %c0_i32, %c0_i32_0 : i32, i32
  }
  func.func @transform_9(%arg0: i32) -> (i32, i32) {
    %c0_i32 = arith.constant 0 : i32
    %c0_i32_0 = arith.constant 0 : i32
    return %arg0, %c0_i32 : i32, i32
  }
  func.func @transform_10(%arg0: i32) -> (i32, i32) {
    %c0_i32 = arith.constant 0 : i32
    %c0_i32_0 = arith.constant 0 : i32
    return %arg0, %c0_i32 : i32, i32
  }
  func.func @transform_11(%arg0: i32) -> (i32, i32) {
    %c0_i32 = arith.constant 0 : i32
    %c0_i32_0 = arith.constant 0 : i32
    return %arg0, %c0_i32 : i32, i32
  }
  func.func @transform_12(%arg0: i32) -> (i32, i32) {
    %c0_i32 = arith.constant 0 : i32
    %c0_i32_0 = arith.constant 0 : i32
    return %arg0, %c0_i32 : i32, i32
  }
}

module attributes {stable_mosaic.version = 11 : i64} {
  func.func @_vae_kernel(%arg0: i32, %arg1: memref<8x128xf32, #tpu.memory_space<vmem>>, %arg2: memref<128x128xbf16, #tpu.memory_space<vmem>>, %arg3: memref<1x128xf32, #tpu.memory_space<vmem>>, %arg4: memref<128x256xbf16, #tpu.memory_space<vmem>>, %arg5: memref<1x256xf32, #tpu.memory_space<vmem>>, %arg6: memref<128x128xbf16, #tpu.memory_space<vmem>>, %arg7: memref<1x128xf32, #tpu.memory_space<vmem>>, %arg8: memref<128x128xbf16, #tpu.memory_space<vmem>>, %arg9: memref<1x128xf32, #tpu.memory_space<vmem>>, %arg10: memref<8x128xf32, #tpu.memory_space<vmem>>, %arg11: memref<8x128xf32, #tpu.memory_space<vmem>>, %arg12: memref<8x128xf32, #tpu.memory_space<vmem>>, %arg13: memref<8x128xf32, #tpu.memory_space<vmem>>) attributes {dimension_semantics = [#tpu.dimension_semantics<arbitrary>], iteration_bounds = array<i64: 1>, scalar_prefetch = 0 : i64, scratch_operands = 0 : i64, tpu.core_type = #tpu.core_type<tc>, window_params = [{transform_indices = @transform_0, window_bounds = array<i64: 8, 128>}, {pipeline_mode = #tpu.pipeline_mode<synchronous>, transform_indices = @transform_1, window_bounds = array<i64: 128, 128>}, {pipeline_mode = #tpu.pipeline_mode<synchronous>, transform_indices = @transform_2, window_bounds = array<i64: 1, 128>}, {pipeline_mode = #tpu.pipeline_mode<synchronous>, transform_indices = @transform_3, window_bounds = array<i64: 128, 256>}, {pipeline_mode = #tpu.pipeline_mode<synchronous>, transform_indices = @transform_4, window_bounds = array<i64: 1, 256>}, {pipeline_mode = #tpu.pipeline_mode<synchronous>, transform_indices = @transform_5, window_bounds = array<i64: 128, 128>}, {pipeline_mode = #tpu.pipeline_mode<synchronous>, transform_indices = @transform_6, window_bounds = array<i64: 1, 128>}, {pipeline_mode = #tpu.pipeline_mode<synchronous>, transform_indices = @transform_7, window_bounds = array<i64: 128, 128>}, {pipeline_mode = #tpu.pipeline_mode<synchronous>, transform_indices = @transform_8, window_bounds = array<i64: 1, 128>}, {transform_indices = @transform_9, window_bounds = array<i64: 8, 128>}, {transform_indices = @transform_10, window_bounds = array<i64: 8, 128>}, {transform_indices = @transform_11, window_bounds = array<i64: 8, 128>}, {transform_indices = @transform_12, window_bounds = array<i64: 8, 128>}]} {
    %c0 = arith.constant 0 : index
    %c0_0 = arith.constant 0 : index
    %0 = vector.load %arg1[%c0, %c0_0] : memref<8x128xf32, #tpu.memory_space<vmem>>, vector<8x128xf32>
    %1 = arith.truncf %0 : vector<8x128xf32> to vector<8x128xbf16>
    %c0_1 = arith.constant 0 : index
    %c0_2 = arith.constant 0 : index
    %2 = vector.load %arg2[%c0_1, %c0_2] : memref<128x128xbf16, #tpu.memory_space<vmem>>, vector<128x128xbf16>
    %cst = arith.constant dense<0.000000e+00> : vector<8x128xf32>
    %3 = tpu.matmul %1, %2, %cst {dimension_numbers = #tpu.dot_dimension_numbers<[1], [0], [0], [1], [0, 0, 1, 1], [], []>} : vector<8x128xbf16>, vector<128x128xbf16>, vector<8x128xf32> -> vector<8x128xf32>
    %c0_3 = arith.constant 0 : index
    %c0_4 = arith.constant 0 : index
    %4 = vector.load %arg3[%c0_3, %c0_4] : memref<1x128xf32, #tpu.memory_space<vmem>>, vector<1x128xf32>
    %5 = vector.broadcast %4 : vector<1x128xf32> to vector<8x128xf32>
    %6 = arith.addf %3, %5 : vector<8x128xf32>
    %cst_5 = arith.constant 0.000000e+00 : f32
    %7 = vector.broadcast %cst_5 : f32 to vector<8x128xf32>
    %8 = arith.maximumf %6, %7 : vector<8x128xf32>
    %9 = arith.truncf %8 : vector<8x128xf32> to vector<8x128xbf16>
    %c0_6 = arith.constant 0 : index
    %c0_7 = arith.constant 0 : index
    %10 = vector.load %arg4[%c0_6, %c0_7] : memref<128x256xbf16, #tpu.memory_space<vmem>>, vector<128x256xbf16>
    %cst_8 = arith.constant dense<0.000000e+00> : vector<8x256xf32>
    %11 = tpu.matmul %9, %10, %cst_8 {dimension_numbers = #tpu.dot_dimension_numbers<[1], [0], [0], [1], [0, 0, 1, 1], [], []>} : vector<8x128xbf16>, vector<128x256xbf16>, vector<8x256xf32> -> vector<8x256xf32>
    %c0_9 = arith.constant 0 : index
    %c0_10 = arith.constant 0 : index
    %12 = vector.load %arg5[%c0_9, %c0_10] : memref<1x256xf32, #tpu.memory_space<vmem>>, vector<1x256xf32>
    %13 = vector.broadcast %12 : vector<1x256xf32> to vector<8x256xf32>
    %14 = arith.addf %11, %13 : vector<8x256xf32>
    %15 = vector.extract_strided_slice %14 {offsets = [0, 0], sizes = [8, 128], strides = [1, 1]} : vector<8x256xf32> to vector<8x128xf32>
    %16 = vector.extract_strided_slice %14 {offsets = [0, 128], sizes = [8, 128], strides = [1, 1]} : vector<8x256xf32> to vector<8x128xf32>
    %c0_11 = arith.constant 0 : index
    %c0_12 = arith.constant 0 : index
    %17 = vector.load %arg10[%c0_11, %c0_12] : memref<8x128xf32, #tpu.memory_space<vmem>>, vector<8x128xf32>
    %cst_13 = arith.constant 5.000000e-01 : f32
    %18 = vector.broadcast %cst_13 : f32 to vector<8x128xf32>
    %19 = arith.mulf %18, %16 : vector<8x128xf32>
    %20 = math.exp %19 : vector<8x128xf32>
    %21 = arith.mulf %17, %20 : vector<8x128xf32>
    %22 = arith.addf %15, %21 : vector<8x128xf32>
    %23 = arith.truncf %22 : vector<8x128xf32> to vector<8x128xbf16>
    %c0_14 = arith.constant 0 : index
    %c0_15 = arith.constant 0 : index
    %24 = vector.load %arg6[%c0_14, %c0_15] : memref<128x128xbf16, #tpu.memory_space<vmem>>, vector<128x128xbf16>
    %cst_16 = arith.constant dense<0.000000e+00> : vector<8x128xf32>
    %25 = tpu.matmul %23, %24, %cst_16 {dimension_numbers = #tpu.dot_dimension_numbers<[1], [0], [0], [1], [0, 0, 1, 1], [], []>} : vector<8x128xbf16>, vector<128x128xbf16>, vector<8x128xf32> -> vector<8x128xf32>
    %c0_17 = arith.constant 0 : index
    %c0_18 = arith.constant 0 : index
    %26 = vector.load %arg7[%c0_17, %c0_18] : memref<1x128xf32, #tpu.memory_space<vmem>>, vector<1x128xf32>
    %27 = vector.broadcast %26 : vector<1x128xf32> to vector<8x128xf32>
    %28 = arith.addf %25, %27 : vector<8x128xf32>
    %cst_19 = arith.constant 0.000000e+00 : f32
    %29 = vector.broadcast %cst_19 : f32 to vector<8x128xf32>
    %30 = arith.maximumf %28, %29 : vector<8x128xf32>
    %31 = arith.truncf %30 : vector<8x128xf32> to vector<8x128xbf16>
    %c0_20 = arith.constant 0 : index
    %c0_21 = arith.constant 0 : index
    %32 = vector.load %arg8[%c0_20, %c0_21] : memref<128x128xbf16, #tpu.memory_space<vmem>>, vector<128x128xbf16>
    %cst_22 = arith.constant dense<0.000000e+00> : vector<8x128xf32>
    %33 = tpu.matmul %31, %32, %cst_22 {dimension_numbers = #tpu.dot_dimension_numbers<[1], [0], [0], [1], [0, 0, 1, 1], [], []>} : vector<8x128xbf16>, vector<128x128xbf16>, vector<8x128xf32> -> vector<8x128xf32>
    %c0_23 = arith.constant 0 : index
    %c0_24 = arith.constant 0 : index
    %34 = vector.load %arg9[%c0_23, %c0_24] : memref<1x128xf32, #tpu.memory_space<vmem>>, vector<1x128xf32>
    %35 = vector.broadcast %34 : vector<1x128xf32> to vector<8x128xf32>
    %36 = arith.addf %33, %35 : vector<8x128xf32>
    %37 = arith.negf %36 : vector<8x128xf32>
    %38 = math.exp %37 : vector<8x128xf32>
    %cst_25 = arith.constant 1.000000e+00 : f32
    %39 = vector.broadcast %cst_25 : f32 to vector<8x128xf32>
    %40 = arith.addf %39, %38 : vector<8x128xf32>
    %41 = arith.divf %39, %40 : vector<8x128xf32>
    %c0_26 = arith.constant 0 : index
    %c0_27 = arith.constant 0 : index
    %42 = vector.load %arg11[%c0_26, %c0_27] : memref<8x128xf32, #tpu.memory_space<vmem>>, vector<8x128xf32>
    tpu.vector_store %arg11[%c0_26, %c0_27], %41 {strides = array<i32>} : memref<8x128xf32, #tpu.memory_space<vmem>>, vector<8x128xf32>,
    %c0_28 = arith.constant 0 : index
    %c0_29 = arith.constant 0 : index
    %43 = vector.load %arg12[%c0_28, %c0_29] : memref<8x128xf32, #tpu.memory_space<vmem>>, vector<8x128xf32>
    tpu.vector_store %arg12[%c0_28, %c0_29], %15 {strides = array<i32>} : memref<8x128xf32, #tpu.memory_space<vmem>>, vector<8x128xf32>,
    %c0_30 = arith.constant 0 : index
    %c0_31 = arith.constant 0 : index
    %44 = vector.load %arg13[%c0_30, %c0_31] : memref<8x128xf32, #tpu.memory_space<vmem>>, vector<8x128xf32>
    tpu.vector_store %arg13[%c0_30, %c0_31], %16 {strides = array<i32>} : memref<8x128xf32, #tpu.memory_space<vmem>>, vector<8x128xf32>,
    return
  }
  func.func @transform_0(%arg0: i32) -> (i32, i32) {
    %c0_i32 = arith.constant 0 : i32
    %c0_i32_0 = arith.constant 0 : i32
    return %arg0, %c0_i32 : i32, i32
  }
  func.func @transform_1(%arg0: i32) -> (i32, i32) {
    %c0_i32 = arith.constant 0 : i32
    %c0_i32_0 = arith.constant 0 : i32
    %c0_i32_1 = arith.constant 0 : i32
    return %c0_i32, %c0_i32_0 : i32, i32
  }
  func.func @transform_2(%arg0: i32) -> (i32, i32) {
    %c0_i32 = arith.constant 0 : i32
    %c0_i32_0 = arith.constant 0 : i32
    %c0_i32_1 = arith.constant 0 : i32
    return %c0_i32, %c0_i32_0 : i32, i32
  }
  func.func @transform_3(%arg0: i32) -> (i32, i32) {
    %c0_i32 = arith.constant 0 : i32
    %c0_i32_0 = arith.constant 0 : i32
    %c0_i32_1 = arith.constant 0 : i32
    return %c0_i32, %c0_i32_0 : i32, i32
  }
  func.func @transform_4(%arg0: i32) -> (i32, i32) {
    %c0_i32 = arith.constant 0 : i32
    %c0_i32_0 = arith.constant 0 : i32
    %c0_i32_1 = arith.constant 0 : i32
    return %c0_i32, %c0_i32_0 : i32, i32
  }
  func.func @transform_5(%arg0: i32) -> (i32, i32) {
    %c0_i32 = arith.constant 0 : i32
    %c0_i32_0 = arith.constant 0 : i32
    %c0_i32_1 = arith.constant 0 : i32
    return %c0_i32, %c0_i32_0 : i32, i32
  }
  func.func @transform_6(%arg0: i32) -> (i32, i32) {
    %c0_i32 = arith.constant 0 : i32
    %c0_i32_0 = arith.constant 0 : i32
    %c0_i32_1 = arith.constant 0 : i32
    return %c0_i32, %c0_i32_0 : i32, i32
  }
  func.func @transform_7(%arg0: i32) -> (i32, i32) {
    %c0_i32 = arith.constant 0 : i32
    %c0_i32_0 = arith.constant 0 : i32
    %c0_i32_1 = arith.constant 0 : i32
    return %c0_i32, %c0_i32_0 : i32, i32
  }
  func.func @transform_8(%arg0: i32) -> (i32, i32) {
    %c0_i32 = arith.constant 0 : i32
    %c0_i32_0 = arith.constant 0 : i32
    %c0_i32_1 = arith.constant 0 : i32
    return %c0_i32, %c0_i32_0 : i32, i32
  }
  func.func @transform_9(%arg0: i32) -> (i32, i32) {
    %c0_i32 = arith.constant 0 : i32
    %c0_i32_0 = arith.constant 0 : i32
    return %arg0, %c0_i32 : i32, i32
  }
  func.func @transform_10(%arg0: i32) -> (i32, i32) {
    %c0_i32 = arith.constant 0 : i32
    %c0_i32_0 = arith.constant 0 : i32
    return %arg0, %c0_i32 : i32, i32
  }
  func.func @transform_11(%arg0: i32) -> (i32, i32) {
    %c0_i32 = arith.constant 0 : i32
    %c0_i32_0 = arith.constant 0 : i32
    return %arg0, %c0_i32 : i32, i32
  }
  func.func @transform_12(%arg0: i32) -> (i32, i32) {
    %c0_i32 = arith.constant 0 : i32
    %c0_i32_0 = arith.constant 0 : i32
    return %arg0, %c0_i32 : i32, i32
  }
}

</mosaic_0001>

<bundles_post_ra>
// kernel: tpu_custom_call.1
= control target key start
LH: loop header
LB: loop body
LE: loop exit
PB: predicated region body
PF: predicated region fallthrough
CT: control target
= control target key end

     0   :  { %18 = vsyncpa [#allocation3], 0  ;;  %s1183_s0 = inlined_call_operand.hbm [shape: f32[8,128], index: 0, kind: input, shape index: {}]   ;;  %s1184_s1 = inlined_call_operand.hbm [shape: bf16[128,128], index: 1, kind: input, shape index: {}]   ;;  %s1185_s2 = inlined_call_operand.vmem [shape: f32[1,128], index: 2, kind: input, shape index: {}]   ;;  %s1186_s3 = inlined_call_operand.hbm [shape: bf16[128,256], index: 3, kind: input, shape index: {}]   ;;  %s1187_s4 = inlined_call_operand.vmem [shape: f32[1,256], index: 4, kind: input, shape index: {}]   ;;  %s1188_s5 = inlined_call_operand.hbm [shape: bf16[128,128], index: 5, kind: input, shape index: {}]   ;;  %s1189_s6 = inlined_call_operand.vmem [shape: f32[1,128], index: 6, kind: input, shape index: {}]   ;;  %s1190_s7 = inlined_call_operand.hbm [shape: bf16[128,128], index: 7, kind: input, shape index: {}]   ;;  %s1191_s8 = inlined_call_operand.vmem [shape: f32[1,128], index: 8, kind: input, shape index: {}]   ;;  %s1192_s9 = inlined_call_operand.vmem [shape: f32[8,128], index: 9, kind: input, shape index: {}]   ;;  %s1193_s10 = inlined_call_operand.hbm [shape: f32[8,128], index: 10, kind: output, shape index: {0}]   ;;  %s1194_s11 = inlined_call_operand.hbm [shape: f32[8,128], index: 11, kind: output, shape index: {1}]   ;;  %s1195_s12 = inlined_call_operand.hbm [shape: f32[8,128], index: 12, kind: output, shape index: {2}]  }
   0x1   :  { %19 = vsyncpa [#allocation6], 0 }
   0x2   :  { %20 = vsyncpa [#allocation9], 0 }
   0x3   :  { %21 = vsyncpa [#allocation4], 0 }
   0x4   :  { %22 = vsyncpa [#allocation13], 0  ;;  %s1025_s21 = smov [#allocation5]  }
   0x5   :  { %s38_s22 = sshll.u32 %s1025_s21, 4  ;;  %s39_s22 = int_to_ptr.vmem [resolvable:$true] %s38_s22 }
   0x6   :  { %s863_s23 = scalar_lea.vmem %s39_s22, 1024  ;;  %p868_p1 = scmp.lt.s32.totalorder %s39_s22, %s39_s22 }
   0x7   :  { %p864_p0 = scmp.ne.s32.totalorder %s39_s22, %s863_s23  ;;  %p869_p2 = scmp.lt.s32.totalorder %s863_s23, %s863_s23 }
   0x9   :  { %p870_p3 = por %p869_p2, %p868_p1 }
   0xb   :  { %p871_p4 = pnand %p870_p3, %p864_p0 }
   0xd   :  { %874 = shalt.err (!%p871_p4)
}
   0xe   :  { %s1026_s24 = smov 64   ;;  %s1027_s25 = smov 4  }
   0xf   :  { %44 = dma.hbm_to_vmem [thread:$0]  %s1184_s1, 1024, %s39_s22, [#allocation6], %s1026_s24, %s1026_s24, %s1027_s25  }
  0x10   :  { %s1028_s28 = smov [#allocation8]   ;;  %s1029_s30 = smov [#allocation2]  }
  0x11   :  { %s66_s29 = sshll.u32 %s1028_s28, 4  ;;  %s29_s13 = sshll.u32 %s1029_s30, 4  ;;  %s67_s29 = int_to_ptr.vmem [resolvable:$true] %s66_s29  ;;  %s30_s13 = int_to_ptr.vmem [resolvable:$true] %s29_s13 }
  0x12   :  { %s883_s14 = scalar_lea.vmem %s67_s29, 1024  ;;  %p888_p6 = scmp.lt.s32.totalorder %s67_s29, %s67_s29 }
  0x13   :  { %p884_p5 = scmp.ne.s32.totalorder %s67_s29, %s883_s14  ;;  %p889_p7 = scmp.lt.s32.totalorder %s883_s14, %s883_s14 }
  0x15   :  { %p890_p8 = por %p889_p7, %p888_p6 }
  0x17   :  { %p891_p9 = pnand %p890_p8, %p884_p5 }
  0x19   :  { %894 = shalt.err (!%p891_p9)
}
  0x1a   :  { %72 = dma.hbm_to_vmem [thread:$0]  %s1188_s5, 1024, %s67_s29, [#allocation9], %s1026_s24, %s1026_s24, %s1027_s25  }
  0x1b   :  { %s903_s1 = scalar_lea.vmem %s30_s13, 128  ;;  %p908_p11 = scmp.lt.s32.totalorder %s30_s13, %s30_s13 }
  0x1c   :  { %p904_p10 = scmp.ne.s32.totalorder %s30_s13, %s903_s1  ;;  %p909_p12 = scmp.lt.s32.totalorder %s903_s1, %s903_s1 }
  0x1e   :  { %p910_p13 = por %p909_p12, %p908_p11 }
  0x20   :  { %p911_p0 = pnand %p910_p13, %p904_p10 }
  0x22   :  { %914 = shalt.err (!%p911_p0)
}
  0x23   :  { %32 = dma.hbm_to_vmem [thread:$0]  %s1183_s0, 128, %s30_s13, [#allocation3]  }
  0x24   :  { %s1030_s19 = smov [#allocation7]  }
  0x25   :  { %s52_s20 = sshll.u32 %s1030_s19, 4  ;;  %s53_s20 = int_to_ptr.vmem [resolvable:$true] %s52_s20 }
  0x26   :  { %s923_s21 = scalar_lea.vmem %s53_s20, 2048  ;;  %p928_p2 = scmp.lt.s32.totalorder %s53_s20, %s53_s20 }
  0x27   :  { %p924_p1 = scmp.ne.s32.totalorder %s53_s20, %s923_s21  ;;  %p929_p3 = scmp.lt.s32.totalorder %s923_s21, %s923_s21 }
  0x29   :  { %p930_p4 = por %p929_p3, %p928_p2 }
  0x2b   :  { %p931_p5 = pnand %p930_p4, %p924_p1 }
  0x2d   :  { %934 = shalt.err (!%p931_p5)
}
  0x2e   :  { %s1031_s5 = smov 128   ;;  %s1032_s22 = smov 8  }
  0x2f   :  { %58 = dma.hbm_to_vmem [thread:$0]  %s1186_s3, 2048, %s53_s20, [#allocation6], %s1031_s5, %s1031_s5, %s1032_s22  }
  0x30   :  { %s1033_s27 = smov [#allocation10]  }
  0x31   :  { %s80_s28 = sshll.u32 %s1033_s27, 4  ;;  %s81_s28 = int_to_ptr.vmem [resolvable:$true] %s80_s28 }
  0x32   :  { %s943_s0 = scalar_lea.vmem %s81_s28, 1024  ;;  %p948_p7 = scmp.lt.s32.totalorder %s81_s28, %s81_s28 }
  0x33   :  { %p944_p6 = scmp.ne.s32.totalorder %s81_s28, %s943_s0  ;;  %p949_p8 = scmp.lt.s32.totalorder %s943_s0, %s943_s0 }
  0x35   :  { %p950_p9 = por %p949_p8, %p948_p7 }
  0x37   :  { %p951_p10 = pnand %p950_p9, %p944_p6 }
  0x39   :  { %954 = shalt.err (!%p951_p10)
}
  0x3a   :  { %86 = dma.hbm_to_vmem [thread:$0]  %s1190_s7, 1024, %s81_s28, [#allocation9], %s1026_s24, %s1026_s24, %s1027_s25  }
  0x3b   :  { %1015 = dma.done.wait [#allocation3], 128  }
  0x3c   :  { %1016 = vsyncadd [#allocation3], 4294967168 }
  0x3d   :  { %1017 = dma.done.wait [#allocation6], 3072  }
  0x3e   :  { %1018 = vsyncadd [#allocation6], 4294964224 }
  0x3f   :  { %1019 = dma.done.wait [#allocation9], 2048  }
  0x40   :  { %1020 = vsyncadd [#allocation9], 4294965248  ;;  %v1034_v0 = vmov 0.0   ;;  %vm1035_vm0 = vmmov 0   ;;  %v801_v1 = vld [vmem:[#allocation5 + $0x38] sm:$0xff]   ;;  %v802_v2 = vld [vmem:[#allocation5 + $0x30] sm:$0xff]   ;;  %v240_v50 = vlaneseq }
  0x41   :  { %726 = vmatprep.subr.bf16.mxu0 %v1034_v0  ;;  %742 = vmatprep.mubr.msk.bf16.mxu0 %vm1035_vm0, %v1034_v0  ;;  %v803_v3 = vld [vmem:[#allocation5 + $0x28] sm:$0xff]   ;;  %v809_v4 = vld [vmem:[#allocation7 + $0x74] ss:$8 sps:$4 sm:$0xff]   ;;  %v811_v5 = vld [vmem:[#allocation7 + $0x70] ss:$8 sps:$4 sm:$0xff]   ;;  %v1036_v27 = vmov 0  }
  0x42   :  { %727 = vmatpush3.bf16.msra.mxu0 %v801_v1  ;;  %v804_v6 = vld [vmem:[#allocation5 + $0x20] sm:$0xff]   ;;  %330 = vmatprep.subr.bf16.mxu1 %v809_v4  ;;  %v815_v9 = vld [vmem:[#allocation7 + $0x54] ss:$8 sps:$4 sm:$0xff]   ;;  %v817_v11 = vld [vmem:[#allocation7 + $0x50] ss:$8 sps:$4 sm:$0xff]   ;;  %v241_v51 = vshrl.u32 %v240_v50, 7 }
  0x43   :  { %728 = vmatprep.subr.bf16.mxu0 %v1034_v0  ;;  %v812_v7 = vld [vmem:[#allocation7 + $0x64] ss:$8 sps:$4 sm:$0xff]   ;;  %331 = vmatpush1.bf16.msra.mxu1 %v811_v5  ;;  %v814_v8 = vld [vmem:[#allocation7 + $0x60] ss:$8 sps:$4 sm:$0xff]   ;;  %v805_v10 = vld [vmem:[#allocation5 + $0x18] sm:$0xff]  }
  0x44   :  { %332 = vmatprep.subr.bf16.mxu1 %v812_v7  ;;  %v806_v12 = vld [vmem:[#allocation5 + $0x10] sm:$0xff]   ;;  %v818_v13 = vld [vmem:[#allocation7 + $0x44] ss:$8 sps:$4 sm:$0xff]   ;;  %v820_v14 = vld [vmem:[#allocation7 + $0x40] ss:$8 sps:$4 sm:$0xff]   ;;  %362 = vmatprep.mubr.bf16.mxu1 %v1036_v27  ;;  %v242_v52 = vsub.s32 0, %v241_v51 }
  0x45   :  { %v821_v15 = vld [vmem:[#allocation7 + $0x34] ss:$8 sps:$4 sm:$0xff]   ;;  %v807_v16 = vld [vmem:[#allocation5 + $0x8] sm:$0xff]   ;;  %v823_v17 = vld [vmem:[#allocation7 + $0x30] ss:$8 sps:$4 sm:$0xff]   ;;  %v246_v54 = vsub.s32 1, %v241_v51 }
  0x46   :  { %729 = vmatpush3.bf16.msra.mxu0 %v802_v2  ;;  %v824_v18 = vld [vmem:[#allocation7 + $0x24] ss:$8 sps:$4 sm:$0xff]   ;;  %v107_v20 = vld [vmem:[#allocation2] sm:$0xff]  ;;  %v826_v21 = vld [vmem:[#allocation7 + $0x20] ss:$8 sps:$4 sm:$0xff]  }
  0x47   :  { %730 = vmatprep.subr.bf16.mxu0 %v1034_v0  ;;  %333 = vmatpush1.bf16.msra.mxu1 %v814_v8  ;;  %v808_v19 = vld [vmem:[#allocation5] sm:$0xff]   ;;  %v108_v22 = vpack.c.bf16 %v107_v20, %v107_v20  ;;  %v827_v23 = vld [vmem:[#allocation7 + $0x14] ss:$8 sps:$4 sm:$0xff]   ;;  %v829_v24 = vld [vmem:[#allocation7 + $0x10] ss:$8 sps:$4 sm:$0xff]  }
  0x48   :  { %334 = vmatprep.subr.bf16.mxu1 %v815_v9  ;;  %v830_v25 = vld [vmem:[#allocation7 + $0x4] ss:$8 sps:$4 sm:$0xff]   ;;  %v832_v26 = vld [vmem:[#allocation7] ss:$8 sps:$4 sm:$0xff]   ;;  %v833_v28 = vld [vmem:[#allocation8 + $0x38] sm:$0xff]  }
  0x49   :  { %v655_v29 = vld [vmem:[%s1185_s2] ss:$0 sm:$0xff]  ;;  %v834_v37 = vld [vmem:[#allocation8 + $0x30] sm:$0xff]   ;;  %v835_v38 = vld [vmem:[#allocation8 + $0x28] sm:$0xff]  }
  0x4a   :  { %731 = vmatpush3.bf16.msra.mxu0 %v803_v3  ;;  %v836_v39 = vld [vmem:[#allocation8 + $0x20] sm:$0xff]   ;;  %v837_v40 = vld [vmem:[#allocation8 + $0x18] sm:$0xff]   ;;  %v838_v41 = vld [vmem:[#allocation8 + $0x10] sm:$0xff]  }
  0x4b   :  { %732 = vmatprep.subr.bf16.mxu0 %v1034_v0  ;;  %335 = vmatpush1.bf16.msra.mxu1 %v817_v11  ;;  %v839_v42 = vld [vmem:[#allocation8 + $0x8] sm:$0xff]   ;;  %v840_v43 = vld [vmem:[#allocation8] sm:$0xff]   ;;  %v841_v44 = vld [vmem:[#allocation10 + $0x38] sm:$0xff]  }
  0x4c   :  { %336 = vmatprep.subr.bf16.mxu1 %v818_v13  ;;  %v842_v45 = vld [vmem:[#allocation10 + $0x30] sm:$0xff]   ;;  %v843_v46 = vld [vmem:[#allocation10 + $0x28] sm:$0xff]   ;;  %v844_v47 = vld [vmem:[#allocation10 + $0x20] sm:$0xff]  }
  0x4d   :  { %v845_v48 = vld [vmem:[#allocation10 + $0x18] sm:$0xff]   ;;  %v846_v49 = vld [vmem:[#allocation10 + $0x10] sm:$0xff]   ;;  %v847_v7 = vld [vmem:[#allocation10 + $0x8] sm:$0xff]  }
  0x4e   :  { %733 = vmatpush3.bf16.msra.mxu0 %v804_v6  ;;  %v238_v53 = vld [vmem:[%s1187_s4] sm:$0x3]  ;;  %v848_v8 = vld [vmem:[#allocation10] sm:$0xff]  }
  0x4f   :  { %734 = vmatprep.subr.bf16.mxu0 %v1034_v0  ;;  %337 = vmatpush1.bf16.msra.mxu1 %v820_v14  ;;  %v243_v55 = vrot.slane %v238_v53, %v242_v52  ;;  %v247_v56 = vrot.slane %v238_v53, %v246_v54  ;;  %v371_v2 = vld [vmem:[%s1192_s9] sm:$0xff]  ;;  %s1037_s9 = smov [#allocation12]  }
  0x50   :  { %338 = vmatprep.subr.bf16.mxu1 %v821_v15  ;;  %v680_v9 = vld [vmem:[%s1189_s6] ss:$0 sm:$0xff]  ;;  %s627_s15 = sshll.u32 %s1037_s9, 4  ;;  %s628_s15 = int_to_ptr.vmem [resolvable:$true] %s627_s15 }
  0x51   :  { %s955_s16 = scalar_lea.vmem %s628_s15, 128  ;;  %p960_p12 = scmp.lt.s32.totalorder %s628_s15, %s628_s15 }
  0x52   :  { %735 = vmatpush3.bf16.msra.mxu0 %v805_v10  ;;  %p956_p11 = scmp.ne.s32.totalorder %s628_s15, %s955_s16  ;;  %p961_p13 = scmp.lt.s32.totalorder %s955_s16, %s955_s16 }
  0x53   :  { %736 = vmatprep.subr.bf16.mxu0 %v1034_v0  ;;  %339 = vmatpush1.bf16.msra.mxu1 %v823_v17 }
  0x54   :  { %340 = vmatprep.subr.bf16.mxu1 %v824_v18  ;;  %p962_p0 = por %p961_p13, %p960_p12 }
  0x56   :  { %737 = vmatpush3.bf16.msra.mxu0 %v806_v12  ;;  %p963_p1 = pnand %p962_p0, %p956_p11 }
  0x57   :  { %738 = vmatprep.subr.bf16.mxu0 %v1034_v0  ;;  %341 = vmatpush1.bf16.msra.mxu1 %v826_v21 }
  0x58   :  { %342 = vmatprep.subr.bf16.mxu1 %v827_v23 }
  0x5a   :  { %739 = vmatpush3.bf16.msra.mxu0 %v807_v16 }
  0x5b   :  { %740 = vmatprep.subr.bf16.mxu0 %v1034_v0  ;;  %343 = vmatpush1.bf16.msra.mxu1 %v829_v24 }
  0x5c   :  { %344 = vmatprep.subr.bf16.mxu1 %v830_v25 }
  0x5e   :  { %741 = vmatpush3.bf16.msra.mxu0 %v808_v19 }
  0x5f   :  { %746 = vmatprep.subr.bf16.mxu0 %v1034_v0  ;;  %345 = vmatpush1.bf16.msra.mxu1 %v832_v26 }
  0x60   :  { %766 = vmatprep.subr.bf16.mxu1 %v1034_v0 }
  0x61   :  { %743 = vmatmul.mubr.bf16.vlgmr.msra.gmra.mxu0 %v108_v22 }
  0x62   :  { %762 = vmatprep.mubr.msk.bf16.mxu0 %vm1035_vm0, %v1034_v0  ;;  %747 = vmatpush3.bf16.msra.mxu0 %v833_v28 }
  0x63   :  { %748 = vmatprep.subr.bf16.mxu0 %v1034_v0 }
  0x66   :  { %749 = vmatpush3.bf16.msra.mxu0 %v834_v37 }
  0x67   :  { %750 = vmatprep.subr.bf16.mxu0 %v1034_v0 }
  0x6a   :  { %751 = vmatpush3.bf16.msra.mxu0 %v835_v38 }
  0x6b   :  { %752 = vmatprep.subr.bf16.mxu0 %v1034_v0 }
  0x6e   :  { %753 = vmatpush3.bf16.msra.mxu0 %v836_v39 }
  0x6f   :  { %754 = vmatprep.subr.bf16.mxu0 %v1034_v0 }
  0x72   :  { %755 = vmatpush3.bf16.msra.mxu0 %v837_v40 }
  0x73   :  { %756 = vmatprep.subr.bf16.mxu0 %v1034_v0 }
  0x76   :  { %757 = vmatpush3.bf16.msra.mxu0 %v838_v41 }
  0x77   :  { %758 = vmatprep.subr.bf16.mxu0 %v1034_v0 }
  0x7a   :  { %759 = vmatpush3.bf16.msra.mxu0 %v839_v42 }
  0x7b   :  { %760 = vmatprep.subr.bf16.mxu0 %v1034_v0 }
  0x7e   :  { %761 = vmatpush3.bf16.msra.mxu0 %v840_v43 }
 0x121   :  { %v214_v30 = vpop.f32.mrf.mxu0 }
 0x122   :  { %v215_v31 = vadd.f32 %v655_v29, %v214_v30 }
 0x123   :  { %v744_v32 = vpop.f32.mrf.mxu0 }
 0x124   :  { %v220_v33 = vmax.f32 %v215_v31, 0.0 }
 0x125   :  { %v217_v34 = vpop.f32.mrf.mxu0 }
 0x126   :  { %v221_v35 = vpack.c.bf16 %v220_v33, %v220_v33 }
 0x127   :  { %v745_v36 = vpop.f32.mrf.mxu0 }
 0x128   :  { %363 = vmatmul.mubr.bf16.vlgmr.msra.gmra.mxu1 %v221_v35 }
 0x129   :  { %782 = vmatprep.mubr.msk.bf16.mxu1 %vm1035_vm0, %v1034_v0  ;;  %767 = vmatpush3.bf16.msra.mxu1 %v841_v44 }
 0x12a   :  { %768 = vmatprep.subr.bf16.mxu1 %v1034_v0 }
 0x12d   :  { %769 = vmatpush3.bf16.msra.mxu1 %v842_v45 }
 0x12e   :  { %770 = vmatprep.subr.bf16.mxu1 %v1034_v0 }
 0x131   :  { %771 = vmatpush3.bf16.msra.mxu1 %v843_v46 }
 0x132   :  { %772 = vmatprep.subr.bf16.mxu1 %v1034_v0 }
 0x135   :  { %773 = vmatpush3.bf16.msra.mxu1 %v844_v47 }
 0x136   :  { %774 = vmatprep.subr.bf16.mxu1 %v1034_v0 }
 0x139   :  { %775 = vmatpush3.bf16.msra.mxu1 %v845_v48 }
 0x13a   :  { %776 = vmatprep.subr.bf16.mxu1 %v1034_v0 }
 0x13d   :  { %777 = vmatpush3.bf16.msra.mxu1 %v846_v49 }
 0x13e   :  { %778 = vmatprep.subr.bf16.mxu1 %v1034_v0 }
 0x141   :  { %779 = vmatpush3.bf16.msra.mxu1 %v847_v7 }
 0x142   :  { %780 = vmatprep.subr.bf16.mxu1 %v1034_v0 }
 0x145   :  { %781 = vmatpush3.bf16.msra.mxu1 %v848_v8 }
 0x1e8   :  { %v364_v57 = vpop.f32.mrf.mxu1 }
 0x1e9   :  { %v365_v58 = vadd.f32 %v364_v57, %v243_v55 }
 0x1ea   :  { %v366_v59 = vpop.f32.mrf.mxu1 }
 0x1eb   :  { %609 = vst [vmem:[#allocation12] sm:$0xff] %v365_v58  ;;  %v367_v60 = vadd.f32 %v366_v59, %v247_v56 }
 0x1ec   :  { %v368_v61 = vpop.f32.mrf.mxu1 }
 0x1ed   :  { %v372_v62 = vmul.f32 0.5, %v367_v60  ;;  %610 = vst [vmem:[#allocation14] sm:$0xff] %v367_v60 }
 0x1ee   :  { %v369_v63 = vpop.f32.mrf.mxu1 }
 0x1ef   :  { %v373_v1 = vmul.f32 1.442695, %v372_v62 }
 0x1f1   :  { %849 = vpow2.f32 %v373_v1 }
 0x1fe   :  { %v850_v3 = vpop.eup %849 }
 0x1ff   :  { %v375_v4 = vmul.f32 %v850_v3, %v371_v2 }
 0x201   :  { %v376_v5 = vadd.f32 %v375_v4, %v365_v58 }
 0x203   :  { %v377_v6 = vpack.c.bf16 %v376_v5, %v376_v5 }
 0x205   :  { %763 = vmatmul.mubr.bf16.vlgmr.msra.gmra.mxu0 %v377_v6 }
 0x2c5   :  { %v483_v10 = vpop.f32.mrf.mxu0 }
 0x2c6   :  { %v484_v11 = vadd.f32 %v680_v9, %v483_v10 }
 0x2c7   :  { %v764_v12 = vpop.f32.mrf.mxu0 }
 0x2c8   :  { %v489_v13 = vmax.f32 %v484_v11, 0.0 }
 0x2c9   :  { %v486_v14 = vpop.f32.mrf.mxu0 }
 0x2ca   :  { %v490_v15 = vpack.c.bf16 %v489_v13, %v489_v13 }
 0x2cb   :  { %v765_v16 = vpop.f32.mrf.mxu0 }
 0x2cc   :  { %783 = vmatmul.mubr.bf16.vlgmr.msra.gmra.mxu1 %v490_v15 }
 0x2cd   :  { %966 = shalt.err (!%p963_p1)
}
 0x2ce   :  { %630 = dma.vmem_to_hbm [thread:$0]  %s628_s15, 128, %s1194_s11, [#allocation13]  }
 0x2cf   :  { %s1038_s17 = smov [#allocation14]  }
 0x2d0   :  { %s637_s18 = sshll.u32 %s1038_s17, 4  ;;  %s638_s18 = int_to_ptr.vmem [resolvable:$true] %s637_s18 }
 0x2d1   :  { %s975_s19 = scalar_lea.vmem %s638_s18, 128  ;;  %p980_p3 = scmp.lt.s32.totalorder %s638_s18, %s638_s18 }
 0x2d2   :  { %p976_p2 = scmp.ne.s32.totalorder %s638_s18, %s975_s19  ;;  %p981_p4 = scmp.lt.s32.totalorder %s975_s19, %s975_s19 }
 0x2d4   :  { %p982_p5 = por %p981_p4, %p980_p3 }
 0x2d6   :  { %p983_p6 = pnand %p982_p5, %p976_p2 }
 0x2d8   :  { %986 = shalt.err (!%p983_p6)
}
 0x2d9   :  { %640 = dma.vmem_to_hbm [thread:$0]  %s638_s18, 128, %s1195_s12, [#allocation13]   ;;  %v689_v0 = vld [vmem:[%s1191_s8] ss:$0 sm:$0xff] }
 0x2da   :  { %s1039_s11 = smov [#allocation11]  }
 0x2db   :  { %s617_s23 = sshll.u32 %s1039_s11, 4  ;;  %s618_s23 = int_to_ptr.vmem [resolvable:$true] %s617_s23 }
 0x2dc   :  { %s995_s12 = scalar_lea.vmem %s618_s23, 128  ;;  %p1000_p8 = scmp.lt.s32.totalorder %s618_s23, %s618_s23 }
 0x2dd   :  { %p996_p7 = scmp.ne.s32.totalorder %s618_s23, %s995_s12  ;;  %p1001_p9 = scmp.lt.s32.totalorder %s995_s12, %s995_s12 }
 0x2df   :  { %p1002_p10 = por %p1001_p9, %p1000_p8 }
 0x2e1   :  { %p1003_p11 = pnand %p1002_p10, %p996_p7 }
 0x38c   :  { %v596_v17 = vpop.f32.mrf.mxu1 }
 0x38d   :  { %v597_v18 = vadd.f32 %v689_v0, %v596_v17 }
 0x38e   :  { %v784_v19 = vpop.f32.mrf.mxu1 }
 0x38f   :  { %v698_v20 = vmul.f32 -1.442695, %v597_v18 }
 0x390   :  { %v599_v21 = vpop.f32.mrf.mxu1 }
 0x391   :  { %851 = vpow2.f32 %v698_v20 }
 0x392   :  { %v785_v22 = vpop.f32.mrf.mxu1 }
 0x39e   :  { %v852_v23 = vpop.eup %851 }
 0x39f   :  { %v605_v24 = vadd.f32 1.0, %v852_v23 }
 0x3a1   :  { %853 = vrcp.f32 %v605_v24 }
 0x3ae   :  { %v854_v25 = vpop.eup %853 }
 0x3af   :  { %608 = vst [vmem:[#allocation11] sm:$0xff] %v854_v25 }
 0x3b0   :  { %1006 = shalt.err (!%p1003_p11)
}
 0x3b1   :  { %620 = dma.vmem_to_hbm [thread:$0]  %s618_s23, 128, %s1193_s10, [#allocation4]  }
 0x3b2   :  { %1021 = dma.done.wait [#allocation4], 128  }
 0x3b3   :  { %1022 = vsyncadd [#allocation4], 4294967168 }
 0x3b4   :  { %1023 = dma.done.wait [#allocation13], 256  }
 0x3b5   :  { %1024 = vsyncadd [#allocation13], 4294967040 }
 0x3b6   :  { %650 = vsyncpa [#allocation3], 1 }
 0x3b7   :  { %651 = vsyncpa [#allocation6], 1 }
 0x3b8   :  { %652 = vsyncpa [#allocation9], 1 }
 0x3b9   :  { %653 = vsyncpa [#allocation4], 1 }
 0x3ba   :  { %654 = vsyncpa [#allocation13], 1 }

// kernel: tpu_custom_call.1
= control target key start
LH: loop header
LB: loop body
LE: loop exit
PB: predicated region body
PF: predicated region fallthrough
CT: control target
= control target key end

     0   :  { %18 = vsyncpa [#allocation3], 0  ;;  %s1183_s0 = inlined_call_operand.hbm [shape: f32[8,128], index: 0, kind: input, shape index: {}]   ;;  %s1184_s1 = inlined_call_operand.hbm [shape: bf16[128,128], index: 1, kind: input, shape index: {}]   ;;  %s1185_s2 = inlined_call_operand.vmem [shape: f32[1,128], index: 2, kind: input, shape index: {}]   ;;  %s1186_s3 = inlined_call_operand.hbm [shape: bf16[128,256], index: 3, kind: input, shape index: {}]   ;;  %s1187_s4 = inlined_call_operand.vmem [shape: f32[1,256], index: 4, kind: input, shape index: {}]   ;;  %s1188_s5 = inlined_call_operand.hbm [shape: bf16[128,128], index: 5, kind: input, shape index: {}]   ;;  %s1189_s6 = inlined_call_operand.vmem [shape: f32[1,128], index: 6, kind: input, shape index: {}]   ;;  %s1190_s7 = inlined_call_operand.hbm [shape: bf16[128,128], index: 7, kind: input, shape index: {}]   ;;  %s1191_s8 = inlined_call_operand.vmem [shape: f32[1,128], index: 8, kind: input, shape index: {}]   ;;  %s1192_s9 = inlined_call_operand.vmem [shape: f32[8,128], index: 9, kind: input, shape index: {}]   ;;  %s1193_s10 = inlined_call_operand.hbm [shape: f32[8,128], index: 10, kind: output, shape index: {0}]   ;;  %s1194_s11 = inlined_call_operand.hbm [shape: f32[8,128], index: 11, kind: output, shape index: {1}]   ;;  %s1195_s12 = inlined_call_operand.hbm [shape: f32[8,128], index: 12, kind: output, shape index: {2}]  }
   0x1   :  { %19 = vsyncpa [#allocation6], 0 }
   0x2   :  { %20 = vsyncpa [#allocation9], 0 }
   0x3   :  { %21 = vsyncpa [#allocation4], 0 }
   0x4   :  { %22 = vsyncpa [#allocation13], 0  ;;  %s1025_s21 = smov [#allocation5]  }
   0x5   :  { %s38_s22 = sshll.u32 %s1025_s21, 4  ;;  %s39_s22 = int_to_ptr.vmem [resolvable:$true] %s38_s22 }
   0x6   :  { %s863_s23 = scalar_lea.vmem %s39_s22, 1024  ;;  %p868_p1 = scmp.lt.s32.totalorder %s39_s22, %s39_s22 }
   0x7   :  { %p864_p0 = scmp.ne.s32.totalorder %s39_s22, %s863_s23  ;;  %p869_p2 = scmp.lt.s32.totalorder %s863_s23, %s863_s23 }
   0x9   :  { %p870_p3 = por %p869_p2, %p868_p1 }
   0xb   :  { %p871_p4 = pnand %p870_p3, %p864_p0 }
   0xd   :  { %874 = shalt.err (!%p871_p4)
}
   0xe   :  { %s1026_s24 = smov 64   ;;  %s1027_s25 = smov 4  }
   0xf   :  { %44 = dma.hbm_to_vmem [thread:$0]  %s1184_s1, 1024, %s39_s22, [#allocation6], %s1026_s24, %s1026_s24, %s1027_s25  }
  0x10   :  { %s1028_s28 = smov [#allocation8]   ;;  %s1029_s30 = smov [#allocation2]  }
  0x11   :  { %s66_s29 = sshll.u32 %s1028_s28, 4  ;;  %s29_s13 = sshll.u32 %s1029_s30, 4  ;;  %s67_s29 = int_to_ptr.vmem [resolvable:$true] %s66_s29  ;;  %s30_s13 = int_to_ptr.vmem [resolvable:$true] %s29_s13 }
  0x12   :  { %s883_s14 = scalar_lea.vmem %s67_s29, 1024  ;;  %p888_p6 = scmp.lt.s32.totalorder %s67_s29, %s67_s29 }
  0x13   :  { %p884_p5 = scmp.ne.s32.totalorder %s67_s29, %s883_s14  ;;  %p889_p7 = scmp.lt.s32.totalorder %s883_s14, %s883_s14 }
  0x15   :  { %p890_p8 = por %p889_p7, %p888_p6 }
  0x17   :  { %p891_p9 = pnand %p890_p8, %p884_p5 }
  0x19   :  { %894 = shalt.err (!%p891_p9)
}
  0x1a   :  { %72 = dma.hbm_to_vmem [thread:$0]  %s1188_s5, 1024, %s67_s29, [#allocation9], %s1026_s24, %s1026_s24, %s1027_s25  }
  0x1b   :  { %s903_s1 = scalar_lea.vmem %s30_s13, 128  ;;  %p908_p11 = scmp.lt.s32.totalorder %s30_s13, %s30_s13 }
  0x1c   :  { %p904_p10 = scmp.ne.s32.totalorder %s30_s13, %s903_s1  ;;  %p909_p12 = scmp.lt.s32.totalorder %s903_s1, %s903_s1 }
  0x1e   :  { %p910_p13 = por %p909_p12, %p908_p11 }
  0x20   :  { %p911_p0 = pnand %p910_p13, %p904_p10 }
  0x22   :  { %914 = shalt.err (!%p911_p0)
}
  0x23   :  { %32 = dma.hbm_to_vmem [thread:$0]  %s1183_s0, 128, %s30_s13, [#allocation3]  }
  0x24   :  { %s1030_s19 = smov [#allocation7]  }
  0x25   :  { %s52_s20 = sshll.u32 %s1030_s19, 4  ;;  %s53_s20 = int_to_ptr.vmem [resolvable:$true] %s52_s20 }
  0x26   :  { %s923_s21 = scalar_lea.vmem %s53_s20, 2048  ;;  %p928_p2 = scmp.lt.s32.totalorder %s53_s20, %s53_s20 }
  0x27   :  { %p924_p1 = scmp.ne.s32.totalorder %s53_s20, %s923_s21  ;;  %p929_p3 = scmp.lt.s32.totalorder %s923_s21, %s923_s21 }
  0x29   :  { %p930_p4 = por %p929_p3, %p928_p2 }
  0x2b   :  { %p931_p5 = pnand %p930_p4, %p924_p1 }
  0x2d   :  { %934 = shalt.err (!%p931_p5)
}
  0x2e   :  { %s1031_s5 = smov 128   ;;  %s1032_s22 = smov 8  }
  0x2f   :  { %58 = dma.hbm_to_vmem [thread:$0]  %s1186_s3, 2048, %s53_s20, [#allocation6], %s1031_s5, %s1031_s5, %s1032_s22  }
  0x30   :  { %s1033_s27 = smov [#allocation10]  }
  0x31   :  { %s80_s28 = sshll.u32 %s1033_s27, 4  ;;  %s81_s28 = int_to_ptr.vmem [resolvable:$true] %s80_s28 }
  0x32   :  { %s943_s0 = scalar_lea.vmem %s81_s28, 1024  ;;  %p948_p7 = scmp.lt.s32.totalorder %s81_s28, %s81_s28 }
  0x33   :  { %p944_p6 = scmp.ne.s32.totalorder %s81_s28, %s943_s0  ;;  %p949_p8 = scmp.lt.s32.totalorder %s943_s0, %s943_s0 }
  0x35   :  { %p950_p9 = por %p949_p8, %p948_p7 }
  0x37   :  { %p951_p10 = pnand %p950_p9, %p944_p6 }
  0x39   :  { %954 = shalt.err (!%p951_p10)
}
  0x3a   :  { %86 = dma.hbm_to_vmem [thread:$0]  %s1190_s7, 1024, %s81_s28, [#allocation9], %s1026_s24, %s1026_s24, %s1027_s25  }
  0x3b   :  { %1015 = dma.done.wait [#allocation3], 128  }
  0x3c   :  { %1016 = vsyncadd [#allocation3], 4294967168 }
  0x3d   :  { %1017 = dma.done.wait [#allocation6], 3072  }
  0x3e   :  { %1018 = vsyncadd [#allocation6], 4294964224 }
  0x3f   :  { %1019 = dma.done.wait [#allocation9], 2048  }
  0x40   :  { %1020 = vsyncadd [#allocation9], 4294965248  ;;  %v1034_v0 = vmov 0.0   ;;  %vm1035_vm0 = vmmov 0   ;;  %v801_v1 = vld [vmem:[#allocation5 + $0x38] sm:$0xff]   ;;  %v802_v2 = vld [vmem:[#allocation5 + $0x30] sm:$0xff]   ;;  %v240_v50 = vlaneseq }
  0x41   :  { %726 = vmatprep.subr.bf16.mxu0 %v1034_v0  ;;  %742 = vmatprep.mubr.msk.bf16.mxu0 %vm1035_vm0, %v1034_v0  ;;  %v803_v3 = vld [vmem:[#allocation5 + $0x28] sm:$0xff]   ;;  %v809_v4 = vld [vmem:[#allocation7 + $0x74] ss:$8 sps:$4 sm:$0xff]   ;;  %v811_v5 = vld [vmem:[#allocation7 + $0x70] ss:$8 sps:$4 sm:$0xff]   ;;  %v1036_v27 = vmov 0  }
  0x42   :  { %727 = vmatpush3.bf16.msra.mxu0 %v801_v1  ;;  %v804_v6 = vld [vmem:[#allocation5 + $0x20] sm:$0xff]   ;;  %330 = vmatprep.subr.bf16.mxu1 %v809_v4  ;;  %v815_v9 = vld [vmem:[#allocation7 + $0x54] ss:$8 sps:$4 sm:$0xff]   ;;  %v817_v11 = vld [vmem:[#allocation7 + $0x50] ss:$8 sps:$4 sm:$0xff]   ;;  %v241_v51 = vshrl.u32 %v240_v50, 7 }
  0x43   :  { %728 = vmatprep.subr.bf16.mxu0 %v1034_v0  ;;  %v812_v7 = vld [vmem:[#allocation7 + $0x64] ss:$8 sps:$4 sm:$0xff]   ;;  %331 = vmatpush1.bf16.msra.mxu1 %v811_v5  ;;  %v814_v8 = vld [vmem:[#allocation7 + $0x60] ss:$8 sps:$4 sm:$0xff]   ;;  %v805_v10 = vld [vmem:[#allocation5 + $0x18] sm:$0xff]  }
  0x44   :  { %332 = vmatprep.subr.bf16.mxu1 %v812_v7  ;;  %v806_v12 = vld [vmem:[#allocation5 + $0x10] sm:$0xff]   ;;  %v818_v13 = vld [vmem:[#allocation7 + $0x44] ss:$8 sps:$4 sm:$0xff]   ;;  %v820_v14 = vld [vmem:[#allocation7 + $0x40] ss:$8 sps:$4 sm:$0xff]   ;;  %362 = vmatprep.mubr.bf16.mxu1 %v1036_v27  ;;  %v242_v52 = vsub.s32 0, %v241_v51 }
  0x45   :  { %v821_v15 = vld [vmem:[#allocation7 + $0x34] ss:$8 sps:$4 sm:$0xff]   ;;  %v807_v16 = vld [vmem:[#allocation5 + $0x8] sm:$0xff]   ;;  %v823_v17 = vld [vmem:[#allocation7 + $0x30] ss:$8 sps:$4 sm:$0xff]   ;;  %v246_v54 = vsub.s32 1, %v241_v51 }
  0x46   :  { %729 = vmatpush3.bf16.msra.mxu0 %v802_v2  ;;  %v824_v18 = vld [vmem:[#allocation7 + $0x24] ss:$8 sps:$4 sm:$0xff]   ;;  %v107_v20 = vld [vmem:[#allocation2] sm:$0xff]  ;;  %v826_v21 = vld [vmem:[#allocation7 + $0x20] ss:$8 sps:$4 sm:$0xff]  }
  0x47   :  { %730 = vmatprep.subr.bf16.mxu0 %v1034_v0  ;;  %333 = vmatpush1.bf16.msra.mxu1 %v814_v8  ;;  %v808_v19 = vld [vmem:[#allocation5] sm:$0xff]   ;;  %v108_v22 = vpack.c.bf16 %v107_v20, %v107_v20  ;;  %v827_v23 = vld [vmem:[#allocation7 + $0x14] ss:$8 sps:$4 sm:$0xff]   ;;  %v829_v24 = vld [vmem:[#allocation7 + $0x10] ss:$8 sps:$4 sm:$0xff]  }
  0x48   :  { %334 = vmatprep.subr.bf16.mxu1 %v815_v9  ;;  %v830_v25 = vld [vmem:[#allocation7 + $0x4] ss:$8 sps:$4 sm:$0xff]   ;;  %v832_v26 = vld [vmem:[#allocation7] ss:$8 sps:$4 sm:$0xff]   ;;  %v833_v28 = vld [vmem:[#allocation8 + $0x38] sm:$0xff]  }
  0x49   :  { %v655_v29 = vld [vmem:[%s1185_s2] ss:$0 sm:$0xff]  ;;  %v834_v37 = vld [vmem:[#allocation8 + $0x30] sm:$0xff]   ;;  %v835_v38 = vld [vmem:[#allocation8 + $0x28] sm:$0xff]  }
  0x4a   :  { %731 = vmatpush3.bf16.msra.mxu0 %v803_v3  ;;  %v836_v39 = vld [vmem:[#allocation8 + $0x20] sm:$0xff]   ;;  %v837_v40 = vld [vmem:[#allocation8 + $0x18] sm:$0xff]   ;;  %v838_v41 = vld [vmem:[#allocation8 + $0x10] sm:$0xff]  }
  0x4b   :  { %732 = vmatprep.subr.bf16.mxu0 %v1034_v0  ;;  %335 = vmatpush1.bf16.msra.mxu1 %v817_v11  ;;  %v839_v42 = vld [vmem:[#allocation8 + $0x8] sm:$0xff]   ;;  %v840_v43 = vld [vmem:[#allocation8] sm:$0xff]   ;;  %v841_v44 = vld [vmem:[#allocation10 + $0x38] sm:$0xff]  }
  0x4c   :  { %336 = vmatprep.subr.bf16.mxu1 %v818_v13  ;;  %v842_v45 = vld [vmem:[#allocation10 + $0x30] sm:$0xff]   ;;  %v843_v46 = vld [vmem:[#allocation10 + $0x28] sm:$0xff]   ;;  %v844_v47 = vld [vmem:[#allocation10 + $0x20] sm:$0xff]  }
  0x4d   :  { %v845_v48 = vld [vmem:[#allocation10 + $0x18] sm:$0xff]   ;;  %v846_v49 = vld [vmem:[#allocation10 + $0x10] sm:$0xff]   ;;  %v847_v7 = vld [vmem:[#allocation10 + $0x8] sm:$0xff]  }
  0x4e   :  { %733 = vmatpush3.bf16.msra.mxu0 %v804_v6  ;;  %v238_v53 = vld [vmem:[%s1187_s4] sm:$0x3]  ;;  %v848_v8 = vld [vmem:[#allocation10] sm:$0xff]  }
  0x4f   :  { %734 = vmatprep.subr.bf16.mxu0 %v1034_v0  ;;  %337 = vmatpush1.bf16.msra.mxu1 %v820_v14  ;;  %v243_v55 = vrot.slane %v238_v53, %v242_v52  ;;  %v247_v56 = vrot.slane %v238_v53, %v246_v54  ;;  %v371_v2 = vld [vmem:[%s1192_s9] sm:$0xff]  ;;  %s1037_s9 = smov [#allocation12]  }
  0x50   :  { %338 = vmatprep.subr.bf16.mxu1 %v821_v15  ;;  %v680_v9 = vld [vmem:[%s1189_s6] ss:$0 sm:$0xff]  ;;  %s627_s15 = sshll.u32 %s1037_s9, 4  ;;  %s628_s15 = int_to_ptr.vmem [resolvable:$true] %s627_s15 }
  0x51   :  { %s955_s16 = scalar_lea.vmem %s628_s15, 128  ;;  %p960_p12 = scmp.lt.s32.totalorder %s628_s15, %s628_s15 }
  0x52   :  { %735 = vmatpush3.bf16.msra.mxu0 %v805_v10  ;;  %p956_p11 = scmp.ne.s32.totalorder %s628_s15, %s955_s16  ;;  %p961_p13 = scmp.lt.s32.totalorder %s955_s16, %s955_s16 }
  0x53   :  { %736 = vmatprep.subr.bf16.mxu0 %v1034_v0  ;;  %339 = vmatpush1.bf16.msra.mxu1 %v823_v17 }
  0x54   :  { %340 = vmatprep.subr.bf16.mxu1 %v824_v18  ;;  %p962_p0 = por %p961_p13, %p960_p12 }
  0x56   :  { %737 = vmatpush3.bf16.msra.mxu0 %v806_v12  ;;  %p963_p1 = pnand %p962_p0, %p956_p11 }
  0x57   :  { %738 = vmatprep.subr.bf16.mxu0 %v1034_v0  ;;  %341 = vmatpush1.bf16.msra.mxu1 %v826_v21 }
  0x58   :  { %342 = vmatprep.subr.bf16.mxu1 %v827_v23 }
  0x5a   :  { %739 = vmatpush3.bf16.msra.mxu0 %v807_v16 }
  0x5b   :  { %740 = vmatprep.subr.bf16.mxu0 %v1034_v0  ;;  %343 = vmatpush1.bf16.msra.mxu1 %v829_v24 }
  0x5c   :  { %344 = vmatprep.subr.bf16.mxu1 %v830_v25 }
  0x5e   :  { %741 = vmatpush3.bf16.msra.mxu0 %v808_v19 }
  0x5f   :  { %746 = vmatprep.subr.bf16.mxu0 %v1034_v0  ;;  %345 = vmatpush1.bf16.msra.mxu1 %v832_v26 }
  0x60   :  { %766 = vmatprep.subr.bf16.mxu1 %v1034_v0 }
  0x61   :  { %743 = vmatmul.mubr.bf16.vlgmr.msra.gmra.mxu0 %v108_v22 }
  0x62   :  { %762 = vmatprep.mubr.msk.bf16.mxu0 %vm1035_vm0, %v1034_v0  ;;  %747 = vmatpush3.bf16.msra.mxu0 %v833_v28 }
  0x63   :  { %748 = vmatprep.subr.bf16.mxu0 %v1034_v0 }
  0x66   :  { %749 = vmatpush3.bf16.msra.mxu0 %v834_v37 }
  0x67   :  { %750 = vmatprep.subr.bf16.mxu0 %v1034_v0 }
  0x6a   :  { %751 = vmatpush3.bf16.msra.mxu0 %v835_v38 }
  0x6b   :  { %752 = vmatprep.subr.bf16.mxu0 %v1034_v0 }
  0x6e   :  { %753 = vmatpush3.bf16.msra.mxu0 %v836_v39 }
  0x6f   :  { %754 = vmatprep.subr.bf16.mxu0 %v1034_v0 }
  0x72   :  { %755 = vmatpush3.bf16.msra.mxu0 %v837_v40 }
  0x73   :  { %756 = vmatprep.subr.bf16.mxu0 %v1034_v0 }
  0x76   :  { %757 = vmatpush3.bf16.msra.mxu0 %v838_v41 }
  0x77   :  { %758 = vmatprep.subr.bf16.mxu0 %v1034_v0 }
  0x7a   :  { %759 = vmatpush3.bf16.msra.mxu0 %v839_v42 }
  0x7b   :  { %760 = vmatprep.subr.bf16.mxu0 %v1034_v0 }
  0x7e   :  { %761 = vmatpush3.bf16.msra.mxu0 %v840_v43 }
 0x121   :  { %v214_v30 = vpop.f32.mrf.mxu0 }
 0x122   :  { %v215_v31 = vadd.f32 %v655_v29, %v214_v30 }
 0x123   :  { %v744_v32 = vpop.f32.mrf.mxu0 }
 0x124   :  { %v220_v33 = vmax.f32 %v215_v31, 0.0 }
 0x125   :  { %v217_v34 = vpop.f32.mrf.mxu0 }
 0x126   :  { %v221_v35 = vpack.c.bf16 %v220_v33, %v220_v33 }
 0x127   :  { %v745_v36 = vpop.f32.mrf.mxu0 }
 0x128   :  { %363 = vmatmul.mubr.bf16.vlgmr.msra.gmra.mxu1 %v221_v35 }
 0x129   :  { %782 = vmatprep.mubr.msk.bf16.mxu1 %vm1035_vm0, %v1034_v0  ;;  %767 = vmatpush3.bf16.msra.mxu1 %v841_v44 }
 0x12a   :  { %768 = vmatprep.subr.bf16.mxu1 %v1034_v0 }
 0x12d   :  { %769 = vmatpush3.bf16.msra.mxu1 %v842_v45 }
 0x12e   :  { %770 = vmatprep.subr.bf16.mxu1 %v1034_v0 }
 0x131   :  { %771 = vmatpush3.bf16.msra.mxu1 %v843_v46 }
 0x132   :  { %772 = vmatprep.subr.bf16.mxu1 %v1034_v0 }
 0x135   :  { %773 = vmatpush3.bf16.msra.mxu1 %v844_v47 }
 0x136   :  { %774 = vmatprep.subr.bf16.mxu1 %v1034_v0 }
 0x139   :  { %775 = vmatpush3.bf16.msra.mxu1 %v845_v48 }
 0x13a   :  { %776 = vmatprep.subr.bf16.mxu1 %v1034_v0 }
 0x13d   :  { %777 = vmatpush3.bf16.msra.mxu1 %v846_v49 }
 0x13e   :  { %778 = vmatprep.subr.bf16.mxu1 %v1034_v0 }
 0x141   :  { %779 = vmatpush3.bf16.msra.mxu1 %v847_v7 }
 0x142   :  { %780 = vmatprep.subr.bf16.mxu1 %v1034_v0 }
 0x145   :  { %781 = vmatpush3.bf16.msra.mxu1 %v848_v8 }
 0x1e8   :  { %v364_v57 = vpop.f32.mrf.mxu1 }
 0x1e9   :  { %v365_v58 = vadd.f32 %v364_v57, %v243_v55 }
 0x1ea   :  { %v366_v59 = vpop.f32.mrf.mxu1 }
 0x1eb   :  { %609 = vst [vmem:[#allocation12] sm:$0xff] %v365_v58  ;;  %v367_v60 = vadd.f32 %v366_v59, %v247_v56 }
 0x1ec   :  { %v368_v61 = vpop.f32.mrf.mxu1 }
 0x1ed   :  { %v372_v62 = vmul.f32 0.5, %v367_v60  ;;  %610 = vst [vmem:[#allocation14] sm:$0xff] %v367_v60 }
 0x1ee   :  { %v369_v63 = vpop.f32.mrf.mxu1 }
 0x1ef   :  { %v373_v1 = vmul.f32 1.442695, %v372_v62 }
 0x1f1   :  { %849 = vpow2.f32 %v373_v1 }
 0x1fe   :  { %v850_v3 = vpop.eup %849 }
 0x1ff   :  { %v375_v4 = vmul.f32 %v850_v3, %v371_v2 }
 0x201   :  { %v376_v5 = vadd.f32 %v375_v4, %v365_v58 }
 0x203   :  { %v377_v6 = vpack.c.bf16 %v376_v5, %v376_v5 }
 0x205   :  { %763 = vmatmul.mubr.bf16.vlgmr.msra.gmra.mxu0 %v377_v6 }
 0x2c5   :  { %v483_v10 = vpop.f32.mrf.mxu0 }
 0x2c6   :  { %v484_v11 = vadd.f32 %v680_v9, %v483_v10 }
 0x2c7   :  { %v764_v12 = vpop.f32.mrf.mxu0 }
 0x2c8   :  { %v489_v13 = vmax.f32 %v484_v11, 0.0 }
 0x2c9   :  { %v486_v14 = vpop.f32.mrf.mxu0 }
 0x2ca   :  { %v490_v15 = vpack.c.bf16 %v489_v13, %v489_v13 }
 0x2cb   :  { %v765_v16 = vpop.f32.mrf.mxu0 }
 0x2cc   :  { %783 = vmatmul.mubr.bf16.vlgmr.msra.gmra.mxu1 %v490_v15 }
 0x2cd   :  { %966 = shalt.err (!%p963_p1)
}
 0x2ce   :  { %630 = dma.vmem_to_hbm [thread:$0]  %s628_s15, 128, %s1194_s11, [#allocation13]  }
 0x2cf   :  { %s1038_s17 = smov [#allocation14]  }
 0x2d0   :  { %s637_s18 = sshll.u32 %s1038_s17, 4  ;;  %s638_s18 = int_to_ptr.vmem [resolvable:$true] %s637_s18 }
 0x2d1   :  { %s975_s19 = scalar_lea.vmem %s638_s18, 128  ;;  %p980_p3 = scmp.lt.s32.totalorder %s638_s18, %s638_s18 }
 0x2d2   :  { %p976_p2 = scmp.ne.s32.totalorder %s638_s18, %s975_s19  ;;  %p981_p4 = scmp.lt.s32.totalorder %s975_s19, %s975_s19 }
 0x2d4   :  { %p982_p5 = por %p981_p4, %p980_p3 }
 0x2d6   :  { %p983_p6 = pnand %p982_p5, %p976_p2 }
 0x2d8   :  { %986 = shalt.err (!%p983_p6)
}
 0x2d9   :  { %640 = dma.vmem_to_hbm [thread:$0]  %s638_s18, 128, %s1195_s12, [#allocation13]   ;;  %v689_v0 = vld [vmem:[%s1191_s8] ss:$0 sm:$0xff] }
 0x2da   :  { %s1039_s11 = smov [#allocation11]  }
 0x2db   :  { %s617_s23 = sshll.u32 %s1039_s11, 4  ;;  %s618_s23 = int_to_ptr.vmem [resolvable:$true] %s617_s23 }
 0x2dc   :  { %s995_s12 = scalar_lea.vmem %s618_s23, 128  ;;  %p1000_p8 = scmp.lt.s32.totalorder %s618_s23, %s618_s23 }
 0x2dd   :  { %p996_p7 = scmp.ne.s32.totalorder %s618_s23, %s995_s12  ;;  %p1001_p9 = scmp.lt.s32.totalorder %s995_s12, %s995_s12 }
 0x2df   :  { %p1002_p10 = por %p1001_p9, %p1000_p8 }
 0x2e1   :  { %p1003_p11 = pnand %p1002_p10, %p996_p7 }
 0x38c   :  { %v596_v17 = vpop.f32.mrf.mxu1 }
 0x38d   :  { %v597_v18 = vadd.f32 %v689_v0, %v596_v17 }
 0x38e   :  { %v784_v19 = vpop.f32.mrf.mxu1 }
 0x38f   :  { %v698_v20 = vmul.f32 -1.442695, %v597_v18 }
 0x390   :  { %v599_v21 = vpop.f32.mrf.mxu1 }
 0x391   :  { %851 = vpow2.f32 %v698_v20 }
 0x392   :  { %v785_v22 = vpop.f32.mrf.mxu1 }
 0x39e   :  { %v852_v23 = vpop.eup %851 }
 0x39f   :  { %v605_v24 = vadd.f32 1.0, %v852_v23 }
 0x3a1   :  { %853 = vrcp.f32 %v605_v24 }
 0x3ae   :  { %v854_v25 = vpop.eup %853 }
 0x3af   :  { %608 = vst [vmem:[#allocation11] sm:$0xff] %v854_v25 }
 0x3b0   :  { %1006 = shalt.err (!%p1003_p11)
}
 0x3b1   :  { %620 = dma.vmem_to_hbm [thread:$0]  %s618_s23, 128, %s1193_s10, [#allocation4]  }
 0x3b2   :  { %1021 = dma.done.wait [#allocation4], 128  }
 0x3b3   :  { %1022 = vsyncadd [#allocation4], 4294967168 }
 0x3b4   :  { %1023 = dma.done.wait [#allocation13], 256  }
 0x3b5   :  { %1024 = vsyncadd [#allocation13], 4294967040 }
 0x3b6   :  { %650 = vsyncpa [#allocation3], 1 }
 0x3b7   :  { %651 = vsyncpa [#allocation6], 1 }
 0x3b8   :  { %652 = vsyncpa [#allocation9], 1 }
 0x3b9   :  { %653 = vsyncpa [#allocation4], 1 }
 0x3ba   :  { %654 = vsyncpa [#allocation13], 1 }

</bundles_post_ra>
